<compile_context>
chip_gen: v6e
topology: v6e:2x2x1
jax: 0.10.0
libtpu: 0.0.40
codegen_flags: <defaults>
</compile_context>

<pallas_src>
import functools

import jax
import jax.numpy as jnp
from jax.experimental import pallas as pl
from jax.experimental.pallas import tpu as pltpu


def _classifier_kernel(x_ref, w_ref, b_ref, o_ref, *, inv_hw):
    # x_ref: (TN, C, HW)   w_ref: (C, Kp)   b_ref: (1, Kp)   o_ref: (TN, Kp)
    x = x_ref[...]
    # Global average pool over the spatial (lane) axis; f32 accumulation.
    pooled = jnp.sum(x, axis=-1, dtype=jnp.float32) * inv_hw           # (TN, C)
    # FC layer on the MXU; operands fed in the weight's native dtype.
    # NOTE: if weights are bf16 this downcasts the f32-pooled activations
    # (tiny deviation from a full-f32 reference; exact for f32 weights).
    out = jnp.dot(pooled.astype(w_ref.dtype), w_ref[...],
                  preferred_element_type=jnp.float32)                  # (TN, Kp)
    out = out + b_ref[...].astype(jnp.float32)                         # bcast (1, Kp)
    o_ref[...] = out.astype(o_ref.dtype)


def _round_up(x, m):
    return ((x + m - 1) // m) * m


def _sublane_multiple(dtype):
    # 8 sublanes of 32-bit; sub-32-bit dtypes pack along sublanes.
    return 8 * max(1, 4 // jnp.dtype(dtype).itemsize)


def _choose_tile_n(n, c, hw, x_dtype, kp, out_dtype, fixed_bytes,
                   budget_bytes=32 << 20):
    """Pick batch tile TN so the full double-buffered VMEM footprint
    (2x x block + resident weight/bias + 2x out block) fits `budget_bytes`."""
    x_item = jnp.dtype(x_dtype).itemsize
    out_item = jnp.dtype(out_dtype).itemsize
    x_sub = _sublane_multiple(x_dtype)
    out_sub = _sublane_multiple(out_dtype)
    # Per-batch-row padded footprints (account for sublane/lane tiling pads).
    x_row = _round_up(c, x_sub) * _round_up(hw, 128) * x_item
    out_row = kp * out_item
    per_row = 2 * (x_row + out_row)            # x and out are double-buffered
    avail = max(budget_bytes - fixed_bytes, per_row * out_sub)
    tn = int(avail // per_row)
    tn = max(out_sub, (tn // out_sub) * out_sub)   # sublane-multiple rows
    if tn >= n:
        return n                                    # single full block
    return tn


def classifier_forward(x_nchw, weight, bias):
    """x_nchw: (N, C, H, W); weight: (K, C) [PyTorch layout]; bias: (K,)."""
    N, C, H, W = x_nchw.shape
    K = weight.shape[0]
    HW = H * W

    # NCHW consumed directly: only the spatial dims are flattened (free,
    # contiguous reshape -- no transpose / extra HBM pass over x).
    x = x_nchw.reshape(N, C, HW)
    out_dtype = x.dtype

    # Pad num_classes up to a lane multiple -> unmasked lane-dense stores.
    Kp = _round_up(K, 128)
    w_t = jnp.zeros((C, Kp), dtype=weight.dtype).at[:, :K].set(weight.T)
    b2d = jnp.zeros((1, Kp), dtype=bias.dtype).at[:, :K].set(bias[None, :])

    x_item = jnp.dtype(x.dtype).itemsize
    w_item = jnp.dtype(weight.dtype).itemsize
    out_item = jnp.dtype(out_dtype).itemsize

    # Resident-operand footprint (count weight/bias as double-buffered, since
    # BlockSpec may double-buffer even constant-index inputs).
    w_bytes = _round_up(C, _sublane_multiple(weight.dtype)) * Kp * w_item
    b_bytes = _sublane_multiple(bias.dtype) * Kp * jnp.dtype(bias.dtype).itemsize
    fixed_bytes = 2 * w_bytes + 2 * b_bytes

    TN = _choose_tile_n(N, C, HW, x.dtype, Kp, out_dtype, fixed_bytes)
    grid = (pl.cdiv(N, TN),)   # no batch padding: tail block may be partial

    # Explicit VMEM budget matched to the actual footprint (+ headroom),
    # capped at 48 MiB so it always fits v7x's 64 MiB per-TC VMEM.
    x_block = 2 * TN * _round_up(C, _sublane_multiple(x.dtype)) \
        * _round_up(HW, 128) * x_item
    out_block = 2 * _round_up(TN, _sublane_multiple(out_dtype)) * Kp * out_item
    footprint = x_block + out_block + fixed_bytes
    vmem_limit = int(min(max(footprint + (4 << 20), 8 << 20), 48 << 20))

    kernel = functools.partial(_classifier_kernel, inv_hw=1.0 / float(HW))

    cost = pl.CostEstimate(
        flops=N * C * HW + 2 * N * C * Kp,
        transcendentals=0,
        bytes_accessed=(N * C * HW * x_item
                        + C * Kp * w_item
                        + N * Kp * out_item),
    )

    out = pl.pallas_call(
        kernel,
        out_shape=jax.ShapeDtypeStruct((N, Kp), out_dtype),
        grid=grid,
        in_specs=[
            pl.BlockSpec((TN, C, HW), lambda i: (i, 0, 0)),   # pipelined over batch
            pl.BlockSpec((C, Kp), lambda i: (0, 0)),          # VMEM-resident weight
            pl.BlockSpec((1, Kp), lambda i: (0, 0)),          # VMEM-resident bias
        ],
        out_specs=pl.BlockSpec((TN, Kp), lambda i: (i, 0)),
        compiler_params=pltpu.CompilerParams(
            dimension_semantics=("parallel",),
            vmem_limit_bytes=vmem_limit,
        ),
        cost_estimate=cost,
    )(x, w_t, b2d)

    return out[:, :K]


if __name__ == "__main__":
    # Small shapes consistent with the module (num_features = C).
    N, C, H, W = 2, 32, 8, 8
    num_classes = 16

    key = jax.random.PRNGKey(0)
    kx, kw, kb = jax.random.split(key, 3)

    x = jax.random.normal(kx, (N, C, H, W), dtype=jnp.float32)
    # PyTorch-style Linear init: uniform(-1/sqrt(fan_in), 1/sqrt(fan_in))
    bound = 1.0 / jnp.sqrt(jnp.float32(C))
    weight = jax.random.uniform(kw, (num_classes, C), jnp.float32, -bound, bound)
    bias = jax.random.uniform(kb, (num_classes,), jnp.float32, -bound, bound)

    out = classifier_forward(x, weight, bias)
    out = jax.block_until_ready(out)

    # Reference check (pure JAX)
    ref = jnp.mean(x, axis=(2, 3)) @ weight.T + bias
    assert out.shape == (N, num_classes)
    assert jnp.allclose(out, ref, atol=1e-5, rtol=1e-5)

    print("KERNEL_OK")
</pallas_src>

<mosaic_0001>
module attributes {stable_mosaic.version = 11 : i64} {
  func.func @_classifier_kernel(%arg0: i32, %arg1: memref<2x32x64xf32, #tpu.memory_space<vmem>>, %arg2: memref<32x128xf32, #tpu.memory_space<vmem>>, %arg3: memref<1x128xf32, #tpu.memory_space<vmem>>, %arg4: memref<2x128xf32, #tpu.memory_space<vmem>>) attributes {dimension_semantics = [#tpu.dimension_semantics<parallel>], iteration_bounds = array<i64: 1>, scalar_prefetch = 0 : i64, scratch_operands = 0 : i64, tpu.core_type = #tpu.core_type<tc>, window_params = [{transform_indices = @transform_0, window_bounds = array<i64: 2, 32, 64>}, {pipeline_mode = #tpu.pipeline_mode<synchronous>, transform_indices = @transform_1, window_bounds = array<i64: 32, 128>}, {pipeline_mode = #tpu.pipeline_mode<synchronous>, transform_indices = @transform_2, window_bounds = array<i64: 1, 128>}, {transform_indices = @transform_3, window_bounds = array<i64: 2, 128>}]} {
    %c0 = arith.constant 0 : index
    %c0_0 = arith.constant 0 : index
    %c0_1 = arith.constant 0 : index
    %0 = vector.load %arg1[%c0, %c0_0, %c0_1] : memref<2x32x64xf32, #tpu.memory_space<vmem>>, vector<2x32x64xf32>
    %cst = arith.constant dense<0.000000e+00> : vector<2x32xf32>
    %1 = vector.multi_reduction <add>, %0, %cst [2] : vector<2x32x64xf32> to vector<2x32xf32>
    %cst_2 = arith.constant 1.562500e-02 : f32
    %2 = vector.broadcast %cst_2 : f32 to vector<2x32xf32>
    %3 = arith.mulf %1, %2 : vector<2x32xf32>
    %c0_3 = arith.constant 0 : index
    %c0_4 = arith.constant 0 : index
    %4 = vector.load %arg2[%c0_3, %c0_4] : memref<32x128xf32, #tpu.memory_space<vmem>>, vector<32x128xf32>
    %cst_5 = arith.constant dense<0.000000e+00> : vector<2x128xf32>
    %5 = tpu.matmul %3, %4, %cst_5 {dimension_numbers = #tpu.dot_dimension_numbers<[1], [0], [0], [1], [0, 0, 1, 1], [], []>} : vector<2x32xf32>, vector<32x128xf32>, vector<2x128xf32> -> vector<2x128xf32>
    %c0_6 = arith.constant 0 : index
    %c0_7 = arith.constant 0 : index
    %6 = vector.load %arg3[%c0_6, %c0_7] : memref<1x128xf32, #tpu.memory_space<vmem>>, vector<1x128xf32>
    %7 = vector.broadcast %6 : vector<1x128xf32> to vector<2x128xf32>
    %8 = arith.addf %5, %7 : vector<2x128xf32>
    %c0_8 = arith.constant 0 : index
    %c0_9 = arith.constant 0 : index
    %9 = vector.load %arg4[%c0_8, %c0_9] : memref<2x128xf32, #tpu.memory_space<vmem>>, vector<2x128xf32>
    tpu.vector_store %arg4[%c0_8, %c0_9], %8 {strides = array<i32>} : memref<2x128xf32, #tpu.memory_space<vmem>>, vector<2x128xf32>,
    return
  }
  func.func @transform_0(%arg0: i32) -> (i32, i32, i32) {
    %c0_i32 = arith.constant 0 : i32
    %c0_i32_0 = arith.constant 0 : i32
    %c0_i32_1 = arith.constant 0 : i32
    return %arg0, %c0_i32, %c0_i32_0 : i32, i32, i32
  }
  func.func @transform_1(%arg0: i32) -> (i32, i32) {
    %c0_i32 = arith.constant 0 : i32
    %c0_i32_0 = arith.constant 0 : i32
    %c0_i32_1 = arith.constant 0 : i32
    return %c0_i32, %c0_i32_0 : i32, i32
  }
  func.func @transform_2(%arg0: i32) -> (i32, i32) {
    %c0_i32 = arith.constant 0 : i32
    %c0_i32_0 = arith.constant 0 : i32
    %c0_i32_1 = arith.constant 0 : i32
    return %c0_i32, %c0_i32_0 : i32, i32
  }
  func.func @transform_3(%arg0: i32) -> (i32, i32) {
    %c0_i32 = arith.constant 0 : i32
    %c0_i32_0 = arith.constant 0 : i32
    return %arg0, %c0_i32 : i32, i32
  }
}

</mosaic_0001>

<bundles_post_ra>
// kernel: tpu_custom_call.1
= control target key start
LH: loop header
LB: loop body
LE: loop exit
PB: predicated region body
PF: predicated region fallthrough
CT: control target
= control target key end

     0   :  { %8 = vsyncpa [#allocation3], 0  ;;  %s381_s0 = inlined_call_operand.hbm [shape: f32[2,32,64], index: 0, kind: input, shape index: {}]   ;;  %s382_s1 = inlined_call_operand.hbm [shape: f32[32,128], index: 1, kind: input, shape index: {}]   ;;  %s383_s2 = inlined_call_operand.vmem [shape: f32[1,128], index: 2, kind: input, shape index: {}]   ;;  %s384_s3 = inlined_call_operand.hbm [shape: f32[2,128], index: 3, kind: output, shape index: {}]  }
   0x1   :  { %9 = vsyncpa [#allocation6], 0 }
   0x2   :  { %10 = vsyncpa [#allocation4], 0  ;;  %s332_s12 = smov [#allocation2]  }
   0x3   :  { %s16_s13 = sshll.u32 %s332_s12, 4  ;;  %s17_s13 = int_to_ptr.vmem [resolvable:$true] %s16_s13 }
   0x4   :  { %s274_s14 = scalar_lea.vmem %s17_s13, 1024  ;;  %p279_p1 = scmp.lt.s32.totalorder %s17_s13, %s17_s13 }
   0x5   :  { %p275_p0 = scmp.ne.s32.totalorder %s17_s13, %s274_s14  ;;  %p280_p2 = scmp.lt.s32.totalorder %s274_s14, %s274_s14 }
   0x7   :  { %p281_p3 = por %p280_p2, %p279_p1 }
   0x9   :  { %p282_p4 = pnand %p281_p3, %p275_p0 }
   0xb   :  { %285 = shalt.err (!%p282_p4)
}
   0xc   :  { %s333_s15 = smov 128   ;;  %s334_s16 = smov 8  }
   0xd   :  { %22 = dma.hbm_to_vmem [thread:$0]  %s381_s0, 1024, %s17_s13, [#allocation3], %s333_s15, %s333_s15, %s334_s16  }
   0xe   :  { %s335_s19 = smov [#allocation5]  }
   0xf   :  { %s28_s20 = sshll.u32 %s335_s19, 4  ;;  %s29_s20 = int_to_ptr.vmem [resolvable:$true] %s28_s20 }
  0x10   :  { %s294_s21 = scalar_lea.vmem %s29_s20, 512  ;;  %p299_p6 = scmp.lt.s32.totalorder %s29_s20, %s29_s20 }
  0x11   :  { %p295_p5 = scmp.ne.s32.totalorder %s29_s20, %s294_s21  ;;  %p300_p7 = scmp.lt.s32.totalorder %s294_s21, %s294_s21 }
  0x13   :  { %p301_p8 = por %p300_p7, %p299_p6 }
  0x15   :  { %p302_p9 = pnand %p301_p8, %p295_p5 }
  0x17   :  { %305 = shalt.err (!%p302_p9)
}
  0x18   :  { %34 = dma.hbm_to_vmem [thread:$0]  %s382_s1, 512, %s29_s20, [#allocation6], %s333_s15, %s333_s15, %s334_s16  }
  0x19   :  { %326 = dma.done.wait [#allocation3], 1024  }
  0x1a   :  { %327 = vsyncadd [#allocation3], 4294966272 }
  0x1b   :  { %328 = dma.done.wait [#allocation6], 512  }
  0x1c   :  { %329 = vsyncadd [#allocation6], 4294966784  ;;  %vm51_vm0 = vcmask 523264   ;;  %v47_v0 = vld [vmem:[#allocation2 + $0x20] sm:$0xff]  ;;  %v48_v2 = vld [vmem:[#allocation2 + $0x28] sm:$0xff]  ;;  %v336_v16 = vmov 0.0   ;;  %v103_v21 = vlaneseq }
  0x1d   :  { %v43_v1 = vld [vmem:[#allocation2] sm:$0xff]  ;;  %v64_v3 = vsel %vm51_vm0, %v47_v0, 0.0  ;;  %v44_v5 = vld [vmem:[#allocation2 + $0x8] sm:$0xff]  ;;  %v67_v6 = vsel %vm51_vm0, %v48_v2, 0.0  ;;  %v49_v8 = vld [vmem:[#allocation2 + $0x30] sm:$0xff]  ;;  %248 = vmatprep.subr.mxu0 %v336_v16  ;;  %vm337_vm1 = vmmov 0  }
  0x1e   :  { %v52_v4 = vsel %vm51_vm0, %v43_v1, 0.0  ;;  %65 = vadd.xlane.f32.xlu1 %v64_v3  ;;  %v55_v7 = vsel %vm51_vm0, %v44_v5, 0.0  ;;  %v45_v9 = vld [vmem:[#allocation2 + $0x10] sm:$0xff]  ;;  %v70_v10 = vsel %vm51_vm0, %v49_v8, 0.0  ;;  %v50_v12 = vld [vmem:[#allocation2 + $0x38] sm:$0xff]  ;;  %v85_v19 = vld [vmem:[#allocation5 + $0x8] sm:$0xff]  ;;  %256 = vmatprep.mubr.msk.f32.mxu0 %vm337_vm1, %v336_v16 }
  0x1f   :  { %53 = vadd.xlane.f32.xlu0 %v52_v4  ;;  %v58_v11 = vsel %vm51_vm0, %v45_v9, 0.0  ;;  %v46_v13 = vld [vmem:[#allocation2 + $0x18] sm:$0xff]  ;;  %v73_v14 = vsel %vm51_vm0, %v50_v12, 0.0  ;;  %v86_v18 = vld [vmem:[#allocation5 + $0x10] sm:$0xff]  ;;  %v84_v20 = vld [vmem:[#allocation5] sm:$0xff]  ;;  %v104_v24 = vand.u32 127, %v103_v21 }
  0x20   :  { %v61_v15 = vsel %vm51_vm0, %v46_v13, 0.0  ;;  %v87_v17 = vld [vmem:[#allocation5 + $0x18] sm:$0xff]  ;;  %v106_v26 = vshrl.u32 %v103_v21, 7  ;;  %vm114_vm2 = vcmask 130112   ;;  %vm121_vm3 = vcmask 195712   ;;  %s338_s24 = smov [#allocation7]  }
  0x21   :  { %249 = vmatpush3.msra.mxu0 %v87_v17  ;;  %v109_v25 = vadd.s32 4294967288, %v104_v24  ;;  %v116_v29 = vadd.s32 4294967280, %v104_v24  ;;  %v123_v33 = vadd.s32 4294967272, %v104_v24  ;;  %vm128_vm4 = vcmask 261312   ;;  %v241_v62 = vld [vmem:[%s383_s2] ss:$0 sm:$0xff] }
  0x22   :  { %68 = vadd.xlane.f32.xlu1 %v67_v6  ;;  %250 = vmatprep.subr.mxu0 %v336_v16  ;;  %v107_v34 = vsub.s32 %v104_v24, %v106_v26  ;;  %vm149_vm5 = vcmask 1041409   ;;  %vm151_vm6 = vcmask 261120   ;;  %s231_s25 = sshll.u32 %s338_s24, 4  ;;  %s232_s25 = int_to_ptr.vmem [resolvable:$true] %s231_s25 }
  0x23   :  { %56 = vadd.xlane.f32.xlu0 %v55_v7  ;;  %251 = vmatpush3.msra.mxu0 %v86_v18  ;;  %v112_v30 = vsub.s32 %v109_v25, %v106_v26  ;;  %v119_v35 = vsub.s32 %v116_v29, %v106_v26  ;;  %v126_v44 = vsub.s32 %v123_v33, %v106_v26  ;;  %s306_s26 = scalar_lea.vmem %s232_s25, 32  ;;  %p311_p11 = scmp.lt.s32.totalorder %s232_s25, %s232_s25 }
  0x24   :  { %252 = vmatprep.subr.mxu0 %v336_v16  ;;  %p307_p10 = scmp.ne.s32.totalorder %s232_s25, %s306_s26  ;;  %p312_p12 = scmp.lt.s32.totalorder %s306_s26, %s306_s26 }
  0x25   :  { %253 = vmatpush3.msra.mxu0 %v85_v19 }
  0x26   :  { %71 = vadd.xlane.f32.xlu1 %v70_v10  ;;  %254 = vmatprep.subr.mxu0 %v336_v16  ;;  %p313_p13 = por %p312_p12, %p311_p11 }
  0x27   :  { %59 = vadd.xlane.f32.xlu0 %v58_v11  ;;  %255 = vmatpush3.msra.mxu0 %v84_v20 }
  0x28   :  { %p314_p0 = pnand %p313_p13, %p307_p10 }
  0x2a   :  { %74 = vadd.xlane.f32.xlu1 %v73_v14 }
  0x2b   :  { %62 = vadd.xlane.f32.xlu0 %v61_v15 }
  0xa7   :  { %v66_v22 = vpop.xlane.xlu1 %65 }
  0xa8   :  { %v54_v23 = vpop.xlane.xlu0 %53  ;;  %v80_v38 = vmul.f32 0.015625, %v66_v22 }
  0xa9   :  { %v76_v39 = vmul.f32 0.015625, %v54_v23 }
  0xaa   :  { %v133_v49 = vrot.slane %v80_v38, %v107_v34 }
  0xab   :  { %v69_v27 = vpop.xlane.xlu1 %68  ;;  %v108_v50 = vrot.slane %v76_v39, %v107_v34 }
  0xac   :  { %v57_v28 = vpop.xlane.xlu0 %56  ;;  %v81_v31 = vmul.f32 0.015625, %v69_v27 }
  0xad   :  { %v77_v32 = vmul.f32 0.015625, %v57_v28 }
  0xae   :  { %v137_v42 = vrot.slane %v81_v31, %v112_v30 }
  0xaf   :  { %v72_v36 = vpop.xlane.xlu1 %71  ;;  %v113_v43 = vrot.slane %v77_v32, %v112_v30 }
  0xb0   :  { %v60_v37 = vpop.xlane.xlu0 %59  ;;  %v82_v40 = vmul.f32 0.015625, %v72_v36  ;;  %v138_v53 = vsel %vm114_vm2, %v137_v42, %v133_v49 }
  0xb1   :  { %v78_v41 = vmul.f32 0.015625, %v60_v37  ;;  %v115_v54 = vsel %vm114_vm2, %v113_v43, %v108_v50 }
  0xb2   :  { %v142_v45 = vrot.slane %v82_v40, %v119_v35 }
  0xb3   :  { %v120_v46 = vrot.slane %v78_v41, %v119_v35  ;;  %v75_v47 = vpop.xlane.xlu1 %74 }
  0xb4   :  { %v63_v48 = vpop.xlane.xlu0 %62  ;;  %v83_v51 = vmul.f32 0.015625, %v75_v47  ;;  %v143_v57 = vsel %vm121_vm3, %v142_v45, %v138_v53 }
  0xb5   :  { %v79_v52 = vmul.f32 0.015625, %v63_v48  ;;  %v122_v58 = vsel %vm121_vm3, %v120_v46, %v115_v54 }
  0xb6   :  { %v147_v55 = vrot.slane %v83_v51, %v126_v44 }
  0xb7   :  { %v127_v56 = vrot.slane %v79_v52, %v126_v44 }
  0xb8   :  { %v148_v60 = vsel %vm128_vm4, %v147_v55, %v143_v57 }
  0xb9   :  { %v129_v59 = vsel %vm128_vm4, %v127_v56, %v122_v58 }
  0xba   :  { %v150_v61 = vsel %vm149_vm5, %v148_v60, %v129_v59 }
  0xbb   :  { %257 = vmatmul.mubr.msk.f32.vlgmr.msra.gmra.mxu0 %vm151_vm6, %v150_v61 }
 0x17b   :  { %v220_v63 = vpop.f32.mrf.mxu0 }
 0x17c   :  { %v221_v0 = vadd.f32 %v241_v62, %v220_v63 }
 0x17d   :  { %v258_v1 = vpop.f32.mrf.mxu0 }
 0x17e   :  { %224 = vst [vmem:[#allocation7] sm:$0x3] %v221_v0 }
 0x17f   :  { %317 = shalt.err (!%p314_p0)
}
 0x180   :  { %234 = dma.vmem_to_hbm [thread:$0]  %s232_s25, 32, %s384_s3, [#allocation4]  }
 0x181   :  { %330 = dma.done.wait [#allocation4], 32  }
 0x182   :  { %331 = vsyncadd [#allocation4], 4294967264 }
 0x183   :  { %238 = vsyncpa [#allocation3], 1 }
 0x184   :  { %239 = vsyncpa [#allocation6], 1 }
 0x185   :  { %240 = vsyncpa [#allocation4], 1 }

</bundles_post_ra>
